<compile_context>
chip_gen: v7x
topology: tpu7x:2x2x1
jax: 0.10.0
libtpu: 0.0.40
codegen_flags: <defaults>
</compile_context>

<pallas_src>
import jax
import jax.numpy as jnp
from jax.experimental import pallas as pl
from jax.experimental.pallas import tpu as pltpu


SELU_ALPHA = 1.6732632423543772
SELU_SCALE = 1.0507009873554805
BN_EPS = 1e-5


def _round_up(x, m):
    return ((x + m - 1) // m) * m


def _selu(h):
    # jnp.where selects; the discarded exp(+large)=inf branch is never used.
    return SELU_SCALE * jnp.where(h > 0.0, h, SELU_ALPHA * (jnp.exp(h) - 1.0))


def _make_stats_kernel(n_rows, tile_n, n_tiles, needs_mask):
    """Pass 1: accumulate BN batch statistics of g = x @ W1 across N-tiles."""

    def kernel(x_ref, w1_ref, gamma_ref, beta_ref,
               scale_ref, shift_ref, sum_ref, sumsq_ref):
        i = pl.program_id(0)

        @pl.when(i == 0)
        def _():
            sum_ref[...] = jnp.zeros_like(sum_ref)
            sumsq_ref[...] = jnp.zeros_like(sumsq_ref)

        # g = x @ W1 (Sh.bias cancels under batch-stat BN, so it is omitted).
        g = jnp.dot(x_ref[...].astype(jnp.bfloat16), w1_ref[...],
                    preferred_element_type=jnp.float32)

        def accumulate(gv):
            sum_ref[...] += jnp.sum(gv, axis=0, keepdims=True)
            sumsq_ref[...] += jnp.sum(gv * gv, axis=0, keepdims=True)

        if needs_mask:
            # Only the last tile contains out-of-bounds rows (edge blocks hold
            # unspecified data); every other tile accumulates unmasked.
            @pl.when(i < n_tiles - 1)
            def _():
                accumulate(g)

            @pl.when(i == n_tiles - 1)
            def _():
                row = i * tile_n + jax.lax.broadcasted_iota(jnp.int32, g.shape, 0)
                accumulate(jnp.where(row < n_rows, g, 0.0))  # where: NaN-safe
        else:
            accumulate(g)

        @pl.when(i == n_tiles - 1)
        def _():
            inv_n = jnp.float32(1.0 / n_rows)
            mean = sum_ref[...] * inv_n
            var = jnp.maximum(sumsq_ref[...] * inv_n - mean * mean, 0.0)
            scale = gamma_ref[...] * jax.lax.rsqrt(var + BN_EPS)
            scale_ref[...] = scale
            shift_ref[...] = beta_ref[...] - mean * scale

    return kernel


def _make_forward_kernel(out_dim):
    """Pass 2: g = x@W1 ; BN via precomputed scale/shift ; SELU ; y = act@W2 + b2."""

    def kernel(x_ref, w1_ref, scale_ref, shift_ref, w2_ref, b2_ref, o_ref):
        g = jnp.dot(x_ref[...].astype(jnp.bfloat16), w1_ref[...],
                    preferred_element_type=jnp.float32)
        h = g * scale_ref[...] + shift_ref[...]     # BN (gamma/beta/b1 folded)
        act = _selu(h)                              # Dropout == identity (eval)
        y = jnp.dot(act.astype(w2_ref.dtype), w2_ref[...],
                    preferred_element_type=jnp.float32)
        # W2 is zero-padded to a lane-dense width for the MXU; store only the
        # real out_dim columns so the HBM writeback carries no padding bytes.
        o_ref[...] = (y[:, :out_dim] + b2_ref[...]).astype(o_ref.dtype)

    return kernel


def mlp_forward(x, w1, b1, gamma, beta, w2, b2, *, tile_n=1024):
    # b1 (Sh.bias) cancels exactly under batch-statistic BatchNorm: it shifts
    # the per-feature mean and leaves the variance unchanged, so the normalized
    # activations (and hence the output) do not depend on it.
    del b1
    n, d = x.shape
    h_dim = w1.shape[1]
    out_dim = w2.shape[1]

    # Tile geometry: no padded copy of x; ragged last tile handled in-kernel.
    tile_n = _round_up(max(16, min(tile_n, n)), 16)
    n_tiles = pl.cdiv(n, tile_n)
    needs_mask = (n % tile_n) != 0

    # Lane-dense width for the second matmul only (store stays unpadded).
    o_pad = max(128, _round_up(out_dim, 128))

    x_f = x.astype(jnp.float32)
    w1_b = w1.astype(jnp.bfloat16)
    w2_p = jnp.zeros((h_dim, o_pad), jnp.bfloat16).at[:, :out_dim].set(
        w2.astype(jnp.bfloat16))
    gamma_f = gamma.reshape(1, h_dim).astype(jnp.float32)
    beta_f = beta.reshape(1, h_dim).astype(jnp.float32)
    b2_f = b2.reshape(1, out_dim).astype(jnp.float32)

    x_spec = pl.BlockSpec((tile_n, d), lambda i: (i, 0))
    w1_spec = pl.BlockSpec((d, h_dim), lambda i: (0, 0))
    vec_spec = pl.BlockSpec((1, h_dim), lambda i: (0, 0))

    # ---- Pass 1: global BN statistics (reduction over N-tiles) ---------------
    scale, shift = pl.pallas_call(
        _make_stats_kernel(n, tile_n, n_tiles, needs_mask),
        out_shape=(jax.ShapeDtypeStruct((1, h_dim), jnp.float32),
                   jax.ShapeDtypeStruct((1, h_dim), jnp.float32)),
        grid_spec=pltpu.PrefetchScalarGridSpec(
            num_scalar_prefetch=0,
            grid=(n_tiles,),
            in_specs=[x_spec, w1_spec, vec_spec, vec_spec],
            out_specs=[vec_spec, vec_spec],
            scratch_shapes=[pltpu.VMEM((1, h_dim), jnp.float32),
                            pltpu.VMEM((1, h_dim), jnp.float32)],
        ),
        compiler_params=pltpu.CompilerParams(
            dimension_semantics=("arbitrary",)),
        cost_estimate=pl.CostEstimate(
            flops=2 * n * d * h_dim,
            transcendentals=0,
            bytes_accessed=n * d * 4 + d * h_dim * 2 + 4 * h_dim * 4),
    )(x_f, w1_b, gamma_f, beta_f)

    # ---- Pass 2: forward per tile (parallel over N-tiles) ---------------------
    out = pl.pallas_call(
        _make_forward_kernel(out_dim),
        out_shape=jax.ShapeDtypeStruct((n, out_dim), jnp.float32),
        grid_spec=pltpu.PrefetchScalarGridSpec(
            num_scalar_prefetch=0,
            grid=(n_tiles,),
            in_specs=[
                x_spec, w1_spec, vec_spec, vec_spec,
                pl.BlockSpec((h_dim, o_pad), lambda i: (0, 0)),
                pl.BlockSpec((1, out_dim), lambda i: (0, 0)),
            ],
            out_specs=pl.BlockSpec((tile_n, out_dim), lambda i: (i, 0)),
        ),
        compiler_params=pltpu.CompilerParams(
            dimension_semantics=("parallel",)),
        cost_estimate=pl.CostEstimate(
            flops=2 * n * (d * h_dim + h_dim * o_pad),
            transcendentals=n * h_dim,
            bytes_accessed=(n * d * 4 + d * h_dim * 2 + h_dim * o_pad * 2
                            + 2 * h_dim * 4 + out_dim * 4 + n * out_dim * 4)),
    )(x_f, w1_b, scale, shift, w2_p, b2_f)

    return out


def init_params(key, latent_dim, hidden_dim, output_dim):
    k1, k2 = jax.random.split(key)
    # Sh.weight: kaiming_normal_(fan_in) -> std = sqrt(2 / latent_dim); Sh.bias = 0
    w1 = jax.random.normal(k1, (latent_dim, hidden_dim), jnp.float32) * jnp.sqrt(
        2.0 / latent_dim)
    b1 = jnp.zeros((1, hidden_dim), jnp.float32)
    # BatchNorm1d default init: gamma = 1, beta = 0
    gamma = jnp.ones((1, hidden_dim), jnp.float32)
    beta = jnp.zeros((1, hidden_dim), jnp.float32)
    # Predictor.weight: default Linear init (uniform +- 1/sqrt(hidden)); bias = 0
    bound = 1.0 / jnp.sqrt(hidden_dim)
    w2 = jax.random.uniform(
        k2, (hidden_dim, output_dim), jnp.float32, minval=-bound, maxval=bound)
    b2 = jnp.zeros((1, output_dim), jnp.float32)
    return w1, b1, gamma, beta, w2, b2


def _reference(x, w1, b1, gamma, beta, w2, b2):
    """Pure-JAX reference (includes b1 explicitly; BN cancels it)."""
    h = jnp.dot(x.astype(jnp.bfloat16), w1.astype(jnp.bfloat16),
                preferred_element_type=jnp.float32) + b1
    mean = jnp.mean(h, axis=0, keepdims=True)
    var = jnp.mean((h - mean) ** 2, axis=0, keepdims=True)
    hn = (h - mean) * (gamma * jax.lax.rsqrt(var + BN_EPS)) + beta
    act = _selu(hn)
    return jnp.dot(act.astype(jnp.bfloat16), w2.astype(jnp.bfloat16),
                   preferred_element_type=jnp.float32) + b2


if __name__ == "__main__":
    latent_dim, hidden_dim, output_dim = 32, 128, 16
    batch = 200  # not a multiple of tile_n -> exercises ragged-edge masking

    key = jax.random.PRNGKey(0)
    kx, kp, kb, kg = jax.random.split(key, 4)
    x = jax.random.normal(kx, (batch, latent_dim), jnp.float32)
    w1, b1, gamma, beta, w2, b2 = init_params(kp, latent_dim, hidden_dim,
                                              output_dim)
    # Non-trivial Sh.bias / gamma / beta so the b1-cancellation and folded BN
    # are genuinely exercised (b1 appears in the reference, not in the kernel).
    b1 = 0.3 * jax.random.normal(kb, (1, hidden_dim), jnp.float32)
    gamma = gamma + 0.2 * jax.random.normal(kg, (1, hidden_dim), jnp.float32)
    beta = beta + 0.1

    y_ref = _reference(x, w1, b1, gamma, beta, w2, b2)

    for tn in (64, 1024):  # multi-tile path and single-(rounded)-tile path
        y = mlp_forward(x, w1, b1, gamma, beta, w2, b2, tile_n=tn)
        jax.block_until_ready(y)
        assert y.shape == (batch, output_dim)
        err = float(jnp.max(jnp.abs(y - y_ref)))
        assert jnp.allclose(y, y_ref, atol=1e-2, rtol=1e-2), err

    print("KERNEL_OK")
</pallas_src>

<mosaic_0001>
module attributes {stable_mosaic.version = 11 : i64} {
  func.func @kernel(%arg0: i32, %arg1: memref<64x32xf32, #tpu.memory_space<vmem>>, %arg2: memref<32x128xbf16, #tpu.memory_space<vmem>>, %arg3: memref<1x128xf32, #tpu.memory_space<vmem>>, %arg4: memref<1x128xf32, #tpu.memory_space<vmem>>, %arg5: memref<1x128xf32, #tpu.memory_space<vmem>>, %arg6: memref<1x128xf32, #tpu.memory_space<vmem>>, %arg7: memref<1x128xf32, #tpu.memory_space<vmem>>, %arg8: memref<1x128xf32, #tpu.memory_space<vmem>>) attributes {dimension_semantics = [#tpu.dimension_semantics<arbitrary>], iteration_bounds = array<i64: 4>, scalar_prefetch = 0 : i64, scratch_operands = 2 : i64, tpu.core_type = #tpu.core_type<tc>, window_params = [{transform_indices = @transform_0, window_bounds = array<i64: 64, 32>}, {pipeline_mode = #tpu.pipeline_mode<synchronous>, transform_indices = @transform_1, window_bounds = array<i64: 32, 128>}, {pipeline_mode = #tpu.pipeline_mode<synchronous>, transform_indices = @transform_2, window_bounds = array<i64: 1, 128>}, {pipeline_mode = #tpu.pipeline_mode<synchronous>, transform_indices = @transform_3, window_bounds = array<i64: 1, 128>}, {pipeline_mode = #tpu.pipeline_mode<synchronous>, transform_indices = @transform_4, window_bounds = array<i64: 1, 128>}, {pipeline_mode = #tpu.pipeline_mode<synchronous>, transform_indices = @transform_5, window_bounds = array<i64: 1, 128>}]} {
    %c0_i32 = arith.constant 0 : i32
    %0 = arith.cmpi eq, %arg0, %c0_i32 : i32
    %1 = arith.extui %0 : i1 to i32
    %c0_i32_0 = arith.constant 0 : i32
    %2 = arith.cmpi ne, %1, %c0_i32_0 : i32
    scf.if %2 {
      %cst_9 = arith.constant 0.000000e+00 : f32
      %16 = vector.broadcast %cst_9 : f32 to vector<1x128xf32>
      %c0_10 = arith.constant 0 : index
      %c0_11 = arith.constant 0 : index
      %17 = vector.load %arg7[%c0_10, %c0_11] : memref<1x128xf32, #tpu.memory_space<vmem>>, vector<1x128xf32>
      tpu.vector_store %arg7[%c0_10, %c0_11], %16 {strides = array<i32>} : memref<1x128xf32, #tpu.memory_space<vmem>>, vector<1x128xf32>,
      %cst_12 = arith.constant 0.000000e+00 : f32
      %18 = vector.broadcast %cst_12 : f32 to vector<1x128xf32>
      %c0_13 = arith.constant 0 : index
      %c0_14 = arith.constant 0 : index
      %19 = vector.load %arg8[%c0_13, %c0_14] : memref<1x128xf32, #tpu.memory_space<vmem>>, vector<1x128xf32>
      tpu.vector_store %arg8[%c0_13, %c0_14], %18 {strides = array<i32>} : memref<1x128xf32, #tpu.memory_space<vmem>>, vector<1x128xf32>,
    } else {
    }
    %c0 = arith.constant 0 : index
    %c0_1 = arith.constant 0 : index
    %3 = vector.load %arg1[%c0, %c0_1] : memref<64x32xf32, #tpu.memory_space<vmem>>, vector<64x32xf32>
    %4 = arith.truncf %3 : vector<64x32xf32> to vector<64x32xbf16>
    %c0_2 = arith.constant 0 : index
    %c0_3 = arith.constant 0 : index
    %5 = vector.load %arg2[%c0_2, %c0_3] : memref<32x128xbf16, #tpu.memory_space<vmem>>, vector<32x128xbf16>
    %cst = arith.constant dense<0.000000e+00> : vector<64x128xf32>
    %6 = tpu.matmul %4, %5, %cst {dimension_numbers = #tpu.dot_dimension_numbers<[1], [0], [0], [1], [0, 0, 1, 1], [], []>} : vector<64x32xbf16>, vector<32x128xbf16>, vector<64x128xf32> -> vector<64x128xf32>
    %c3_i32 = arith.constant 3 : i32
    %7 = arith.cmpi slt, %arg0, %c3_i32 : i32
    %8 = arith.extui %7 : i1 to i32
    %c0_i32_4 = arith.constant 0 : i32
    %9 = arith.cmpi ne, %8, %c0_i32_4 : i32
    scf.if %9 {
      %c0_9 = arith.constant 0 : index
      %c0_10 = arith.constant 0 : index
      %16 = vector.load %arg7[%c0_9, %c0_10] : memref<1x128xf32, #tpu.memory_space<vmem>>, vector<1x128xf32>
      %cst_11 = arith.constant dense<0.000000e+00> : vector<128xf32>
      %17 = vector.multi_reduction <add>, %6, %cst_11 [0] : vector<64x128xf32> to vector<128xf32>
      %18 = vector.shape_cast %17 : vector<128xf32> to vector<1x128xf32>
      %19 = arith.addf %16, %18 : vector<1x128xf32>
      %c0_12 = arith.constant 0 : index
      %c0_13 = arith.constant 0 : index
      %20 = vector.load %arg7[%c0_12, %c0_13] : memref<1x128xf32, #tpu.memory_space<vmem>>, vector<1x128xf32>
      tpu.vector_store %arg7[%c0_12, %c0_13], %19 {strides = array<i32>} : memref<1x128xf32, #tpu.memory_space<vmem>>, vector<1x128xf32>,
      %c0_14 = arith.constant 0 : index
      %c0_15 = arith.constant 0 : index
      %21 = vector.load %arg8[%c0_14, %c0_15] : memref<1x128xf32, #tpu.memory_space<vmem>>, vector<1x128xf32>
      %22 = arith.mulf %6, %6 : vector<64x128xf32>
      %cst_16 = arith.constant dense<0.000000e+00> : vector<128xf32>
      %23 = vector.multi_reduction <add>, %22, %cst_16 [0] : vector<64x128xf32> to vector<128xf32>
      %24 = vector.shape_cast %23 : vector<128xf32> to vector<1x128xf32>
      %25 = arith.addf %21, %24 : vector<1x128xf32>
      %c0_17 = arith.constant 0 : index
      %c0_18 = arith.constant 0 : index
      %26 = vector.load %arg8[%c0_17, %c0_18] : memref<1x128xf32, #tpu.memory_space<vmem>>, vector<1x128xf32>
      tpu.vector_store %arg8[%c0_17, %c0_18], %25 {strides = array<i32>} : memref<1x128xf32, #tpu.memory_space<vmem>>, vector<1x128xf32>,
    } else {
    }
    %c3_i32_5 = arith.constant 3 : i32
    %10 = arith.cmpi eq, %arg0, %c3_i32_5 : i32
    %11 = arith.extui %10 : i1 to i32
    %c0_i32_6 = arith.constant 0 : i32
    %12 = arith.cmpi ne, %11, %c0_i32_6 : i32
    scf.if %12 {
      %c64_i32 = arith.constant 64 : i32
      %16 = arith.muli %arg0, %c64_i32 : i32
      %17 = tpu.iota {dimensions = array<i32: 0>} : vector<64x128xi32>
      %18 = vector.broadcast %16 : i32 to vector<64x128xi32>
      %19 = arith.addi %18, %17 : vector<64x128xi32>
      %c200_i32 = arith.constant 200 : i32
      %20 = vector.broadcast %c200_i32 : i32 to vector<64x128xi32>
      %21 = arith.cmpi slt, %19, %20 : vector<64x128xi32>
      %cst_9 = arith.constant 0.000000e+00 : f32
      %22 = vector.broadcast %cst_9 : f32 to vector<64x128xf32>
      %23 = arith.select %21, %6, %22 : vector<64x128xi1>, vector<64x128xf32>
      %c0_10 = arith.constant 0 : index
      %c0_11 = arith.constant 0 : index
      %24 = vector.load %arg7[%c0_10, %c0_11] : memref<1x128xf32, #tpu.memory_space<vmem>>, vector<1x128xf32>
      %cst_12 = arith.constant dense<0.000000e+00> : vector<128xf32>
      %25 = vector.multi_reduction <add>, %23, %cst_12 [0] : vector<64x128xf32> to vector<128xf32>
      %26 = vector.shape_cast %25 : vector<128xf32> to vector<1x128xf32>
      %27 = arith.addf %24, %26 : vector<1x128xf32>
      %c0_13 = arith.constant 0 : index
      %c0_14 = arith.constant 0 : index
      %28 = vector.load %arg7[%c0_13, %c0_14] : memref<1x128xf32, #tpu.memory_space<vmem>>, vector<1x128xf32>
      tpu.vector_store %arg7[%c0_13, %c0_14], %27 {strides = array<i32>} : memref<1x128xf32, #tpu.memory_space<vmem>>, vector<1x128xf32>,
      %c0_15 = arith.constant 0 : index
      %c0_16 = arith.constant 0 : index
      %29 = vector.load %arg8[%c0_15, %c0_16] : memref<1x128xf32, #tpu.memory_space<vmem>>, vector<1x128xf32>
      %30 = arith.mulf %23, %23 : vector<64x128xf32>
      %cst_17 = arith.constant dense<0.000000e+00> : vector<128xf32>
      %31 = vector.multi_reduction <add>, %30, %cst_17 [0] : vector<64x128xf32> to vector<128xf32>
      %32 = vector.shape_cast %31 : vector<128xf32> to vector<1x128xf32>
      %33 = arith.addf %29, %32 : vector<1x128xf32>
      %c0_18 = arith.constant 0 : index
      %c0_19 = arith.constant 0 : index
      %34 = vector.load %arg8[%c0_18, %c0_19] : memref<1x128xf32, #tpu.memory_space<vmem>>, vector<1x128xf32>
      tpu.vector_store %arg8[%c0_18, %c0_19], %33 {strides = array<i32>} : memref<1x128xf32, #tpu.memory_space<vmem>>, vector<1x128xf32>,
    } else {
    }
    %c3_i32_7 = arith.constant 3 : i32
    %13 = arith.cmpi eq, %arg0, %c3_i32_7 : i32
    %14 = arith.extui %13 : i1 to i32
    %c0_i32_8 = arith.constant 0 : i32
    %15 = arith.cmpi ne, %14, %c0_i32_8 : i32
    scf.if %15 {
      %c0_9 = arith.constant 0 : index
      %c0_10 = arith.constant 0 : index
      %16 = vector.load %arg7[%c0_9, %c0_10] : memref<1x128xf32, #tpu.memory_space<vmem>>, vector<1x128xf32>
      %cst_11 = arith.constant 5.000000e-03 : f32
      %17 = vector.broadcast %cst_11 : f32 to vector<1x128xf32>
      %18 = arith.mulf %16, %17 : vector<1x128xf32>
      %c0_12 = arith.constant 0 : index
      %c0_13 = arith.constant 0 : index
      %19 = vector.load %arg8[%c0_12, %c0_13] : memref<1x128xf32, #tpu.memory_space<vmem>>, vector<1x128xf32>
      %cst_14 = arith.constant 5.000000e-03 : f32
      %20 = vector.broadcast %cst_14 : f32 to vector<1x128xf32>
      %21 = arith.mulf %19, %20 : vector<1x128xf32>
      %22 = arith.mulf %18, %18 : vector<1x128xf32>
      %23 = arith.subf %21, %22 : vector<1x128xf32>
      %cst_15 = arith.constant 0.000000e+00 : f32
      %24 = vector.broadcast %cst_15 : f32 to vector<1x128xf32>
      %25 = arith.maximumf %23, %24 : vector<1x128xf32>
      %c0_16 = arith.constant 0 : index
      %c0_17 = arith.constant 0 : index
      %26 = vector.load %arg3[%c0_16, %c0_17] : memref<1x128xf32, #tpu.memory_space<vmem>>, vector<1x128xf32>
      %cst_18 = arith.constant 9.99999974E-6 : f32
      %27 = vector.broadcast %cst_18 : f32 to vector<1x128xf32>
      %28 = arith.addf %25, %27 : vector<1x128xf32>
      %29 = math.rsqrt %28 : vector<1x128xf32>
      %30 = arith.mulf %26, %29 : vector<1x128xf32>
      %c0_19 = arith.constant 0 : index
      %c0_20 = arith.constant 0 : index
      %31 = vector.load %arg5[%c0_19, %c0_20] : memref<1x128xf32, #tpu.memory_space<vmem>>, vector<1x128xf32>
      tpu.vector_store %arg5[%c0_19, %c0_20], %30 {strides = array<i32>} : memref<1x128xf32, #tpu.memory_space<vmem>>, vector<1x128xf32>,
      %c0_21 = arith.constant 0 : index
      %c0_22 = arith.constant 0 : index
      %32 = vector.load %arg4[%c0_21, %c0_22] : memref<1x128xf32, #tpu.memory_space<vmem>>, vector<1x128xf32>
      %33 = arith.mulf %18, %30 : vector<1x128xf32>
      %34 = arith.subf %32, %33 : vector<1x128xf32>
      %c0_23 = arith.constant 0 : index
      %c0_24 = arith.constant 0 : index
      %35 = vector.load %arg6[%c0_23, %c0_24] : memref<1x128xf32, #tpu.memory_space<vmem>>, vector<1x128xf32>
      tpu.vector_store %arg6[%c0_23, %c0_24], %34 {strides = array<i32>} : memref<1x128xf32, #tpu.memory_space<vmem>>, vector<1x128xf32>,
    } else {
    }
    return
  }
  func.func @transform_0(%arg0: i32) -> (i32, i32) {
    %c0_i32 = arith.constant 0 : i32
    %c0_i32_0 = arith.constant 0 : i32
    return %arg0, %c0_i32 : i32, i32
  }
  func.func @transform_1(%arg0: i32) -> (i32, i32) {
    %c0_i32 = arith.constant 0 : i32
    %c0_i32_0 = arith.constant 0 : i32
    %c0_i32_1 = arith.constant 0 : i32
    return %c0_i32, %c0_i32_0 : i32, i32
  }
  func.func @transform_2(%arg0: i32) -> (i32, i32) {
    %c0_i32 = arith.constant 0 : i32
    %c0_i32_0 = arith.constant 0 : i32
    %c0_i32_1 = arith.constant 0 : i32
    return %c0_i32, %c0_i32_0 : i32, i32
  }
  func.func @transform_3(%arg0: i32) -> (i32, i32) {
    %c0_i32 = arith.constant 0 : i32
    %c0_i32_0 = arith.constant 0 : i32
    %c0_i32_1 = arith.constant 0 : i32
    return %c0_i32, %c0_i32_0 : i32, i32
  }
  func.func @transform_4(%arg0: i32) -> (i32, i32) {
    %c0_i32 = arith.constant 0 : i32
    %c0_i32_0 = arith.constant 0 : i32
    %c0_i32_1 = arith.constant 0 : i32
    return %c0_i32, %c0_i32_0 : i32, i32
  }
  func.func @transform_5(%arg0: i32) -> (i32, i32) {
    %c0_i32 = arith.constant 0 : i32
    %c0_i32_0 = arith.constant 0 : i32
    %c0_i32_1 = arith.constant 0 : i32
    return %c0_i32, %c0_i32_0 : i32, i32
  }
}

</mosaic_0001>

<bundles_post_ra>
// kernel: tpu_custom_call.1
= control target key start
LH: loop header
LB: loop body
LE: loop exit
PB: predicated region body
PF: predicated region fallthrough
CT: control target
= control target key end

     0   :  { %11 = vsyncpa [#allocation5], 0  ;;  %s854_s0 = inlined_call_operand.vmem [shape: f32[200,32], index: 0, kind: input, shape index: {}]   ;;  %s855_s1 = inlined_call_operand.vmem [shape: bf16[32,128], index: 1, kind: input, shape index: {}]   ;;  %s856_s2 = inlined_call_operand.vmem [shape: f32[1,128], index: 2, kind: input, shape index: {}]   ;;  %s857_s3 = inlined_call_operand.vmem [shape: f32[1,128], index: 3, kind: input, shape index: {}]   ;;  %s858_s4 = inlined_call_operand.hbm [shape: f32[1,128], index: 4, kind: output, shape index: {0}]   ;;  %s859_s5 = inlined_call_operand.hbm [shape: f32[1,128], index: 5, kind: output, shape index: {1}]  }
   0x1   :  { %12 = vsyncpa [#allocation7], 0  ;;  %s724_s18 = smov 0  }
   0x2 LB: > { %s730_s19 = sadd.s32 4294967295, %s689_s18   ;;  %p555_p0 = scmp.ge.s32.totalorder %s689_s18, 1  ;;  %s689_s18 = sphi %s724_s18, %s18_s18  }
   0x3   : > { %p191_p1 = scmp.lt.s32.totalorder %s689_s18, 5 }
   0x5   : > { %p192_p2 = pnand %p555_p0, %p191_p1 }
   0x6   : > { %s556_s20 = sshll.u32 (!%p192_p2), %s730_s19, 3  ;;  %p558_p4 = scmp.ne.s32.totalorder (!%p192_p2), %s730_s19, 0 }
   0x7   : > { %195 = sbr.rel (%p192_p2) target bundleno = 399 (0x18f), region = 36  ;;  %p223_p3 = scmp.lt.s32.totalorder (!%p192_p2), %s556_s20, 24 }
   0xe   : > { %s861_s20 = smov (!%p223_p3, %s556_s20), 24  ;;  %236 = sbr.rel (%p558_p4) target bundleno = 21 (0x15), region = 40 }
   0xf   : > { %s557_s21 = sshll.u32 %s861_s20, 3  ;;  %v691_v0 = vmov (!%p558_p4), 0.0  }
  0x10   : > { %s226_s24 = scalar_lea.vmem %s854_s0, %s557_s21  ;;  %237 = vst [vmem:[#allocation2] sm:$0x1] (!%p558_p4), %v691_v0  ;;  %238 = vst [vmem:[#allocation3] sm:$0x1] (!%p558_p4), %v691_v0 }
  0x15 PF: > { %v619_v1 = vld [vmem:[%s855_s1] sm:$0xff]   ;;  %v620_v2 = vld [vmem:[%s855_s1 + $0x8] sm:$0xff]   ;;  %vm267_vm0 = vcmask 261120   ;;  %v241_v8 = vld [vmem:[%s226_s24 + $0x10] sm:$0xff]  ;;  %p565_p5 = scmp.ge.s32.totalorder %s730_s19, 3 }
  0x16   : > { %580 = vmatprep.subr.bf16.mxu0 %v619_v1  ;;  %592 = vmatprep.subr.bf16.mxu1 %v619_v1  ;;  %v239_v3 = vld [vmem:[%s226_s24] sm:$0xff]  ;;  %v240_v4 = vld [vmem:[%s226_s24 + $0x8] sm:$0xff]  ;;  %v242_v9 = vld [vmem:[%s226_s24 + $0x18] sm:$0xff] }
  0x17   : > { %v243_v5 = vld [vmem:[%s226_s24 + $0x20] sm:$0xff]  ;;  %581 = vmatpush3.bf16.msra.mxu0 %v619_v1  ;;  %594 = vmatpush3.bf16.msra.mxu1 %v619_v1  ;;  %v247_v6 = vpack.c.bf16 %v240_v4, %v239_v3  ;;  %v244_v7 = vld [vmem:[%s226_s24 + $0x28] sm:$0xff]  ;;  %v245_v11 = vld [vmem:[%s226_s24 + $0x30] sm:$0xff]  ;;  %v248_v13 = vpack.c.bf16 %v242_v9, %v241_v8 }
  0x18   : > { %582 = vmatprep.subr.bf16.mxu0 %v620_v2  ;;  %593 = vmatprep.subr.bf16.mxu1 %v620_v2  ;;  %v249_v10 = vpack.c.bf16 %v244_v7, %v243_v5  ;;  %v246_v12 = vld [vmem:[%s226_s24 + $0x38] sm:$0xff]  ;;  %v349_v54 = vld [vmem:[#allocation2] sm:$0x1] (!%p565_p5)  ;;  %v365_v57 = vld [vmem:[#allocation3] sm:$0x1] (!%p565_p5) }
  0x19   : > { %584 = vmatprep.mubr.msk.bf16.mxu0 %vm267_vm0, %v247_v6  ;;  %v250_v14 = vpack.c.bf16 %v246_v12, %v245_v11 }
  0x1a   : > { %588 = vmatprep.mubr.msk.bf16.mxu1 %vm267_vm0, %v249_v10 }
  0x1b   : > { %583 = vmatpush3.bf16.msra.mxu0 %v620_v2  ;;  %595 = vmatpush3.bf16.msra.mxu1 %v620_v2 }
  0x1e   : > { %585 = vmatmul.mubr.msk.bf16.vlgmr.msra.gmra.mrb[0].mxu0 %vm267_vm0, %v248_v13  ;;  %589 = vmatmul.mubr.msk.bf16.vlgmr.msra.gmra.mrb[0].mxu1 %vm267_vm0, %v250_v14 }
  0xee   : > { %348 = sbr.rel (%p565_p5) target bundleno = 276 (0x114), region = 44 }
  0xf1   : > { %v749_v15 = vpop.f32.mrb[0].mxu0  ;;  %v751_v16 = vpop.f32.mrb[0].mxu1 }
  0xf2   : > { %v753_v17 = vpop.f32.mrb[1].mxu0  ;;  %v755_v18 = vpop.f32.mrb[1].mxu1  ;;  %v368_v26 = vmul.f32 (!%p565_p5), %v749_v15, %v749_v15  ;;  %v372_v37 = vmul.f32 (!%p565_p5), %v751_v16, %v751_v16 }
  0xf3   : > { %v757_v19 = vpop.f32.mrb[2].mxu0  ;;  %v759_v20 = vpop.f32.mrb[2].mxu1  ;;  %v366_v24 = vmul.f32 (!%p565_p5), %v753_v17, %v753_v17  ;;  %v370_v31 = vmul.f32 (!%p565_p5), %v755_v18, %v755_v18 }
  0xf4   : > { %v761_v21 = vpop.f32.mrb[3].mxu0  ;;  %v763_v22 = vpop.f32.mrb[3].mxu1  ;;  %v369_v28 = vmul.f32 (!%p565_p5), %v757_v19, %v757_v19  ;;  %v373_v40 = vmul.f32 (!%p565_p5), %v759_v20, %v759_v20 }
  0xf5   : > { %v350_v23 = vadd.f32 %v761_v21, %v753_v17  ;;  %v367_v25 = vmul.f32 %v761_v21, %v761_v21  ;;  %v371_v34 = vmul.f32 %v763_v22, %v763_v22 }
  0xf7   : > { %v351_v27 = vadd.f32 %v749_v15, %v350_v23  ;;  %v374_v29 = vadd.f32 %v367_v25, %v366_v24 }
  0xf9   : > { %v352_v30 = vadd.f32 %v757_v19, %v351_v27  ;;  %v375_v32 = vadd.f32 %v374_v29, %v368_v26 }
  0xfb   : > { %v353_v33 = vadd.f32 %v352_v30, %v755_v18  ;;  %v376_v35 = vadd.f32 %v375_v32, %v369_v28 }
  0xfd   : > { %v354_v36 = vadd.f32 %v353_v33, %v763_v22  ;;  %v377_v38 = vadd.f32 %v376_v35, %v370_v31 }
  0xff   : > { %v355_v39 = vadd.f32 %v751_v16, %v354_v36  ;;  %v378_v41 = vadd.f32 %v377_v38, %v371_v34 }
 0x101   : > { %v356_v42 = vadd.f32 %v759_v20, %v355_v39  ;;  %v379_v43 = vadd.f32 %v378_v41, %v372_v37 }
 0x103   : > { %v357_v44 = vrot.slane %v356_v42, 4  ;;  %v380_v45 = vadd.f32 %v379_v43, %v373_v40 }
 0x105   : > { %v358_v46 = vadd.f32 %v357_v44, %v356_v42  ;;  %v381_v47 = vrot.slane %v380_v45, 4 }
 0x107   : > { %v359_v48 = vrot.slane %v358_v46, 2  ;;  %v382_v49 = vadd.f32 %v381_v47, %v380_v45 }
 0x109   : > { %v360_v50 = vadd.f32 %v359_v48, %v358_v46  ;;  %v383_v51 = vrot.slane %v382_v49, 2 }
 0x10b   : > { %v361_v52 = vrot.slane %v360_v50, 1  ;;  %v384_v53 = vadd.f32 %v383_v51, %v382_v49 }
 0x10d   : > { %v362_v55 = vadd.f32 %v361_v52, %v360_v50  ;;  %v385_v56 = vrot.slane %v384_v53, 1 }
 0x10f   : > { %v363_v58 = vadd.f32 %v362_v55, %v349_v54  ;;  %v386_v59 = vadd.f32 %v385_v56, %v384_v53 }
 0x111   : > { %364 = vst [vmem:[#allocation2] sm:$0x1] %v363_v58  ;;  %v387_v60 = vadd.f32 %v386_v59, %v365_v57 }
 0x113   : > { %388 = vst [vmem:[#allocation3] sm:$0x1] %v387_v60 }
 0x114 PF: > { %p566_p6 = scmp.ne.s32.totalorder %s730_s19, 3 }
 0x115   : > { %s567_s29 = sshll.u32 (!%p566_p6), %s730_s19, 6  ;;  %v394_v61 = vlaneseq (!%p566_p6) }
 0x116   : > { %392 = sbr.rel (%p566_p6) target bundleno = 351 (0x15f), region = 48  ;;  %v403_v63 = vstv (!%p566_p6), %s567_s29 }
 0x117   : > { %v395_v62 = vshrl.u32 (!%p566_p6), %v394_v61, 7 }
 0x118   : > { %v428_v54 = vld [vmem:[#allocation2] sm:$0x1] (!%p566_p6) }
 0x119   : > { %v396_v0 = vadd.s32 (!%p566_p6), 8, %v395_v62  ;;  %v397_v1 = vadd.s32 (!%p566_p6), 16, %v395_v62  ;;  %v398_v2 = vadd.s32 (!%p566_p6), 24, %v395_v62  ;;  %v399_v3 = vadd.s32 (!%p566_p6), 32, %v395_v62 }
 0x11a   : > { %v400_v4 = vadd.s32 (!%p566_p6), 40, %v395_v62  ;;  %v401_v5 = vadd.s32 (!%p566_p6), 48, %v395_v62  ;;  %v404_v6 = vadd.s32 (!%p566_p6), %v403_v63, %v395_v62  ;;  %v402_v11 = vadd.s32 (!%p566_p6), 56, %v395_v62  ;;  %v444_v58 = vld [vmem:[#allocation3] sm:$0x1] (!%p566_p6) }
 0x11b   : > { %v405_v7 = vadd.s32 (!%p566_p6), %v403_v63, %v396_v0  ;;  %v406_v8 = vadd.s32 (!%p566_p6), %v403_v63, %v397_v1  ;;  %v407_v9 = vadd.s32 (!%p566_p6), %v403_v63, %v398_v2  ;;  %v408_v10 = vadd.s32 (!%p566_p6), %v403_v63, %v399_v3 }
 0x11c   : > { %vm412_vm1 = vcmp.lt.s32.totalorder (!%p566_p6), %v404_v6, 200  ;;  %v409_v12 = vadd.s32 (!%p566_p6), %v403_v63, %v400_v4  ;;  %v410_v14 = vadd.s32 (!%p566_p6), %v403_v63, %v401_v5  ;;  %v411_v25 = vadd.s32 (!%p566_p6), %v403_v63, %v402_v11  ;;  %v475_v5 = vld [vmem:[%s856_s2] sm:$0x1] (!%p566_p6) }
 0x11d   : > { %vm413_vm2 = vcmp.lt.s32.totalorder %v405_v7, 200  ;;  %vm414_vm3 = vcmp.lt.s32.totalorder %v406_v8, 200  ;;  %vm415_vm4 = vcmp.lt.s32.totalorder %v407_v9, 200  ;;  %v420_v13 = vsel %vm412_vm1, %v753_v17, 0.0  ;;  %v480_v8 = vld [vmem:[%s857_s3] sm:$0x1] }
 0x11e   : > { %vm416_vm5 = vcmp.lt.s32.totalorder %v408_v10, 200  ;;  %v421_v23 = vsel %vm413_vm2, %v761_v21, 0.0  ;;  %v422_v24 = vsel %vm414_vm3, %v749_v15, 0.0  ;;  %v423_v26 = vsel %vm415_vm4, %v757_v19, 0.0 }
 0x11f   : > { %v429_v27 = vadd.f32 %v421_v23, %v420_v13  ;;  %vm417_vm6 = vcmp.lt.s32.totalorder %v409_v12, 200  ;;  %v445_v28 = vmul.f32 %v420_v13, %v420_v13  ;;  %v446_v29 = vmul.f32 %v421_v23, %v421_v23 }
 0x120   : > { %v447_v30 = vmul.f32 %v422_v24, %v422_v24  ;;  %v424_v31 = vsel %vm416_vm5, %v755_v18, 0.0  ;;  %vm418_vm7 = vcmp.lt.s32.totalorder %v410_v14, 200  ;;  %v448_v33 = vmul.f32 %v423_v26, %v423_v26 }
 0x121   : > { %v430_v32 = vadd.f32 %v429_v27, %v422_v24  ;;  %v453_v17 = vadd.f32 %v446_v29, %v445_v28  ;;  %v425_v34 = vsel %vm417_vm6, %v763_v22, 0.0  ;;  %vm419_vm8 = vcmp.lt.s32.totalorder %v411_v25, 200 }
 0x122   : > { %v449_v21 = vmul.f32 %v424_v31, %v424_v31  ;;  %v426_v36 = vsel %vm418_vm7, %v751_v16, 0.0  ;;  %v450_v37 = vmul.f32 %v425_v34, %v425_v34  ;;  %v427_v39 = vsel %vm419_vm8, %v759_v20, 0.0 }
 0x123   : > { %v431_v35 = vadd.f32 %v430_v32, %v423_v26  ;;  %v454_v15 = vadd.f32 %v453_v17, %v447_v30  ;;  %v451_v41 = vmul.f32 %v426_v36, %v426_v36  ;;  %v452_v43 = vmul.f32 %v427_v39, %v427_v39 }
 0x125   : > { %v432_v19 = vadd.f32 %v431_v35, %v424_v31  ;;  %v455_v38 = vadd.f32 %v454_v15, %v448_v33 }
 0x127   : > { %v433_v40 = vadd.f32 %v432_v19, %v425_v34  ;;  %v456_v18 = vadd.f32 %v455_v38, %v449_v21 }
 0x129   : > { %v434_v42 = vadd.f32 %v433_v40, %v426_v36  ;;  %v457_v44 = vadd.f32 %v456_v18, %v450_v37 }
 0x12b   : > { %v435_v45 = vadd.f32 %v434_v42, %v427_v39  ;;  %v458_v46 = vadd.f32 %v457_v44, %v451_v41 }
 0x12d   : > { %v436_v22 = vrot.slane %v435_v45, 4  ;;  %v459_v47 = vadd.f32 %v458_v46, %v452_v43 }
 0x12f   : > { %v437_v48 = vadd.f32 %v436_v22, %v435_v45  ;;  %v460_v49 = vrot.slane %v459_v47, 4 }
 0x131   : > { %v438_v50 = vrot.slane %v437_v48, 2  ;;  %v461_v51 = vadd.f32 %v460_v49, %v459_v47 }
 0x133   : > { %v439_v16 = vadd.f32 %v438_v50, %v437_v48  ;;  %v462_v52 = vrot.slane %v461_v51, 2 }
 0x135   : > { %v440_v53 = vrot.slane %v439_v16, 1  ;;  %v463_v55 = vadd.f32 %v462_v52, %v461_v51 }
 0x137   : > { %v441_v20 = vadd.f32 %v440_v53, %v439_v16  ;;  %v464_v56 = vrot.slane %v463_v55, 1 }
 0x139   : > { %v442_v57 = vadd.f32 %v441_v20, %v428_v54  ;;  %v465_v59 = vadd.f32 %v464_v56, %v463_v55 }
 0x13b   : > { %443 = vst [vmem:[#allocation2] sm:$0x1] %v442_v57  ;;  %v466_v60 = vadd.f32 %v465_v59, %v444_v58 }
 0x13d   : > { %467 = vst [vmem:[#allocation3] sm:$0x1] %v466_v60 }
 0x142   : > { %v468_v61 = vld [vmem:[#allocation2] sm:$0x1] }
 0x143   : > { %v469_v62 = vmul.f32 0.005, %v468_v61 }
 0x144   : > { %v470_v63 = vld [vmem:[#allocation3] sm:$0x1] }
 0x145   : > { %v472_v0 = vmul.f32 %v469_v62, %v469_v62  ;;  %v471_v1 = vmul.f32 0.005, %v470_v63 }
 0x147   : > { %v473_v2 = vsub.f32 %v471_v1, %v472_v0 }
 0x149   : > { %v474_v3 = vmax.f32 %v473_v2, 0.0 }
 0x14b   : > { %v476_v4 = vadd.f32 1e-05, %v474_v3 }
 0x14d   : > { %621 = vrsqrt.f32 %v476_v4 }
 0x157   : > { %v622_v6 = vpop.eup %621 }
 0x158   : > { %v478_v7 = vmul.f32 %v622_v6, %v475_v5 }
 0x15a   : > { %479 = vst [vmem:[#allocation4] sm:$0x1] %v478_v7  ;;  %v481_v9 = vmul.f32 %v478_v7, %v469_v62 }
 0x15c   : > { %v482_v10 = vsub.f32 %v480_v8, %v481_v9 }
 0x15e   : > { %483 = vst [vmem:[#allocation6] sm:$0x1] %v482_v10 }
 0x15f PF: > { %p604_p7 = scmp.eq.s32.totalorder %s730_s19, 3  ;;  %s692_s9 = smov [#allocation4]  }
 0x160   : > { %s491_s10 = sshll.u32 %s692_s9, 4  ;;  %s693_s11 = smov [#allocation6]   ;;  %s492_s10 = int_to_ptr.vmem [resolvable:$true] %s491_s10 }
 0x161   : > { %s502_s12 = sshll.u32 %s693_s11, 4  ;;  %s623_s13 = scalar_lea.vmem %s492_s10, 16  ;;  %s503_s12 = int_to_ptr.vmem [resolvable:$true] %s502_s12 }
 0x162   : > { %p624_p8 = scmp.ne.s32.totalorder %s492_s10, %s623_s13  ;;  %s629_s14 = scalar_lea.vmem %s492_s10, 32 }
 0x163   : > { %p630_p11 = scmp.lt.s32.totalorder %s492_s10, %s492_s10  ;;  %p631_p12 = scmp.lt.s32.totalorder %s629_s14, %s623_s13 }
 0x164   : > { %p625_p9 = pnand %p624_p8, %p604_p7 }
 0x165   : > { %p632_p13 = por %p631_p12, %p630_p11 }
 0x166   : > { %p626_p10 = pneg %p625_p9 }
 0x168   : > { %p633_p0 = pnand %p632_p13, %p626_p10 }
 0x16a   : > { %636 = shalt.err (!%p633_p0)
}
 0x16b   : > { %s637_s17 = scalar_lea.hbm %s858_s4, 16 }
 0x16c   : > { %p638_p1 = scmp.ne.s32.totalorder %s858_s4, %s637_s17  ;;  %p643_p4 = scmp.lt.u32.totalorder %s637_s17, %s858_s4 }
 0x16e   : > { %p639_p2 = pnand %p638_p1, %p604_p7 }
 0x170   : > { %p640_p3 = pneg %p639_p2 }
 0x172   : > { %p645_p5 = pnand %p643_p4, %p640_p3 }
 0x174   : > { %648 = shalt.err (!%p645_p5)
}
 0x175   : > { %597 = dma.vmem_to_hbm [thread:$0]  (%p604_p7), %s492_s10, 16, %s858_s4, [#allocation5]  }
 0x176   : > { %s649_s26 = scalar_lea.vmem %s503_s12, 16  ;;  %s655_s27 = scalar_lea.vmem %s503_s12, 32 }
 0x177   : > { %p650_p6 = scmp.ne.s32.totalorder %s503_s12, %s649_s26  ;;  %p656_p10 = scmp.lt.s32.totalorder %s503_s12, %s503_s12 }
 0x178   : > { %p657_p11 = scmp.lt.s32.totalorder %s655_s27, %s649_s26 }
 0x179   : > { %p651_p8 = pnand %p650_p6, %p604_p7 }
 0x17a   : > { %p658_p12 = por %p657_p11, %p656_p10 }
 0x17b   : > { %p652_p9 = pneg %p651_p8 }
 0x17d   : > { %p659_p13 = pnand %p658_p12, %p652_p9 }
 0x17f   : > { %662 = shalt.err (!%p659_p13)
}
 0x180   : > { %s663_s30 = scalar_lea.hbm %s859_s5, 16 }
 0x181   : > { %p664_p0 = scmp.ne.s32.totalorder %s859_s5, %s663_s30  ;;  %p669_p3 = scmp.lt.u32.totalorder %s663_s30, %s859_s5 }
 0x183   : > { %p665_p1 = pnand %p664_p0, %p604_p7 }
 0x185   : > { %p666_p2 = pneg %p665_p1 }
 0x187   : > { %p671_p4 = pnand %p669_p3, %p666_p2 }
 0x189   : > { %674 = shalt.err (!%p671_p4)
}
 0x18a   : > { %599 = dma.vmem_to_hbm [thread:$0]  (%p604_p7), %s503_s12, 16, %s859_s5, [#allocation7]  }
 0x18b   : > { %680 = dma.done.wait (%p604_p7), [#allocation5], 16  }
 0x18c   : > { %682 = vsyncadd (%p604_p7), [#allocation5], 4294967280 }
 0x18d   : > { %684 = dma.done.wait (%p604_p7), [#allocation7], 16  }
 0x18e   : > { %686 = vsyncadd (%p604_p7), [#allocation7], 4294967280 }
 0x18f PF: > { %s18_s18 = sadd.s32 1, %s689_s18  }
 0x190   : > { %p15_p5 = scmp.ge.s32.totalorder %s18_s18, 6  }
 0x192   :  { %17 = sbr.rel (!%p15_p5) target bundleno = 2 (0x2), region = 83 }
 0x199   :  { %519 = vsyncpa [#allocation5], 1 }
 0x19a   :  { %521 = vsyncpa [#allocation5 + $0x1], 1 }
 0x19b   :  { %522 = vsyncpa [#allocation7], 1 }

</bundles_post_ra>
